<compile_context>
chip_gen: v5e
topology: v5e:2x2
jax: 0.10.0
libtpu: 0.0.40
codegen_flags: <defaults>
</compile_context>

<pallas_src>
import functools

import jax
import jax.numpy as jnp
from jax.experimental import pallas as pl
from jax.experimental.pallas import tpu as pltpu

_LANES = 128
_SUBLANES = 8
_MAX_BLOCK_ROWS = 4096  # (4096, 128) f32 = 2 MiB per input per buffer.


def _rmse_kernel(yhat_ref, y_ref, o_ref, acc_ref, *, n_elements, eps):
    i = pl.program_id(0)

    @pl.when(i == 0)
    def _():
        acc_ref[...] = jnp.zeros_like(acc_ref)

    # VPU-only hot loop: cast, subtract, square, and fold the (tm, 128) block
    # into the (8, 128) vreg-shaped accumulator with vreg-wise adds.
    d = yhat_ref[...].astype(jnp.float32) - y_ref[...].astype(jnp.float32)
    sq = d * d
    acc_ref[...] += jnp.sum(sq.reshape(-1, _SUBLANES, _LANES), axis=0)

    @pl.when(i == pl.num_programs(0) - 1)
    def _():
        # Single cross-lane (XLU) reduce + scalar epilogue, done exactly once.
        total = jnp.sum(acc_ref[...])
        o_ref[0, 0] = jnp.sqrt(total / jnp.float32(n_elements) + jnp.float32(eps))


def rmse_loss(yhat: jax.Array, y: jax.Array, eps: float = 1e-6) -> jax.Array:
    """Pallas equivalent of torch.sqrt(nn.MSELoss()(yhat, y) + eps)."""
    assert yhat.shape == y.shape, "yhat and y must have identical shapes"
    n = yhat.size

    # Keep native dtype (upcast happens inside the kernel).
    yh = yhat.reshape(-1)
    yy = y.reshape(-1)

    # Block row count: as large as possible up to _MAX_BLOCK_ROWS, but no
    # larger than needed for small inputs (rounded up to 8 sublanes).
    rows_raw = pl.cdiv(n, _LANES)
    tm = min(_MAX_BLOCK_ROWS, pl.cdiv(rows_raw, _SUBLANES) * _SUBLANES)
    tile_elems = tm * _LANES

    # Pad only the tail if not tile-aligned (zeros contribute 0 to the sum).
    n_pad = pl.cdiv(n, tile_elems) * tile_elems
    if n_pad != n:
        yh = jnp.pad(yh, (0, n_pad - n))
        yy = jnp.pad(yy, (0, n_pad - n))

    rows = n_pad // _LANES
    yh = yh.reshape(rows, _LANES)
    yy = yy.reshape(rows, _LANES)

    grid = (rows // tm,)
    kernel = functools.partial(_rmse_kernel, n_elements=n, eps=eps)

    bytes_accessed = n_pad * (yh.dtype.itemsize + yy.dtype.itemsize) + 4
    cost = pl.CostEstimate(
        flops=3 * n_pad,          # sub + mul + accumulate per element
        transcendentals=1,        # final sqrt
        bytes_accessed=bytes_accessed,
    )

    out = pl.pallas_call(
        kernel,
        out_shape=jax.ShapeDtypeStruct((1, 1), jnp.float32),
        grid_spec=pltpu.PrefetchScalarGridSpec(
            num_scalar_prefetch=0,
            grid=grid,
            in_specs=[
                pl.BlockSpec((tm, _LANES), lambda i: (i, 0)),
                pl.BlockSpec((tm, _LANES), lambda i: (i, 0)),
            ],
            out_specs=pl.BlockSpec(
                (1, 1), lambda i: (0, 0), memory_space=pltpu.SMEM
            ),
            scratch_shapes=[pltpu.VMEM((_SUBLANES, _LANES), jnp.float32)],
        ),
        compiler_params=pltpu.CompilerParams(
            dimension_semantics=("arbitrary",),  # sequential reduction axis
            vmem_limit_bytes=32 * 1024 * 1024,
        ),
        cost_estimate=cost,
    )(yh, yy)
    return out[0, 0]


if __name__ == "__main__":
    key = jax.random.PRNGKey(0)
    k1, k2 = jax.random.split(key)
    # Small shapes consistent with a regression head output (batch=8, targets=5).
    yhat = jax.random.normal(k1, (8, 5), dtype=jnp.float32)
    y = jax.random.normal(k2, (8, 5), dtype=jnp.float32)

    loss = rmse_loss(yhat, y)
    loss = jax.block_until_ready(loss)

    # Reference check in plain JAX (mirrors torch semantics exactly).
    ref = jnp.sqrt(jnp.mean((yhat - y) ** 2) + 1e-6)
    assert jnp.allclose(loss, ref, rtol=1e-5, atol=1e-6), (loss, ref)

    # Extra check: a larger, non-tile-aligned, bf16 case.
    k3, k4 = jax.random.split(k2)
    yhat2 = jax.random.normal(k3, (37, 1000), dtype=jnp.bfloat16)
    y2 = jax.random.normal(k4, (37, 1000), dtype=jnp.bfloat16)
    loss2 = jax.block_until_ready(rmse_loss(yhat2, y2))
    ref2 = jnp.sqrt(
        jnp.mean((yhat2.astype(jnp.float32) - y2.astype(jnp.float32)) ** 2) + 1e-6
    )
    assert jnp.allclose(loss2, ref2, rtol=1e-3, atol=1e-3), (loss2, ref2)

    # Extra check: multi-block path (forces grid > 1 with the 4096-row blocks).
    k5, k6 = jax.random.split(k4)
    yhat3 = jax.random.normal(k5, (1024, 1152), dtype=jnp.float32)
    y3 = jax.random.normal(k6, (1024, 1152), dtype=jnp.float32)
    loss3 = jax.block_until_ready(rmse_loss(yhat3, y3))
    ref3 = jnp.sqrt(jnp.mean((yhat3 - y3) ** 2) + 1e-6)
    assert jnp.allclose(loss3, ref3, rtol=1e-5, atol=1e-5), (loss3, ref3)

    print("KERNEL_OK")
</pallas_src>

<mosaic_0001>
module attributes {stable_mosaic.version = 11 : i64} {
  func.func @_rmse_kernel(%arg0: i32, %arg1: memref<8x128xf32, #tpu.memory_space<vmem>>, %arg2: memref<8x128xf32, #tpu.memory_space<vmem>>, %arg3: memref<1x1xf32, #tpu.memory_space<smem>>, %arg4: memref<8x128xf32, #tpu.memory_space<vmem>>) attributes {dimension_semantics = [#tpu.dimension_semantics<arbitrary>], iteration_bounds = array<i64: 1>, scalar_prefetch = 0 : i64, scratch_operands = 1 : i64, tpu.core_type = #tpu.core_type<tc>, window_params = [{transform_indices = @transform_0, window_bounds = array<i64: 8, 128>}, {transform_indices = @transform_1, window_bounds = array<i64: 8, 128>}, {transform_indices = @transform_2, window_bounds = array<i64: 1, 1>}]} {
    %c0_i32 = arith.constant 0 : i32
    %0 = arith.cmpi eq, %arg0, %c0_i32 : i32
    %1 = arith.extui %0 : i1 to i32
    %c0_i32_0 = arith.constant 0 : i32
    %2 = arith.cmpi ne, %1, %c0_i32_0 : i32
    scf.if %2 {
      %cst_10 = arith.constant 0.000000e+00 : f32
      %15 = vector.broadcast %cst_10 : f32 to vector<8x128xf32>
      %c0_11 = arith.constant 0 : index
      %c0_12 = arith.constant 0 : index
      %16 = vector.load %arg4[%c0_11, %c0_12] : memref<8x128xf32, #tpu.memory_space<vmem>>, vector<8x128xf32>
      tpu.vector_store %arg4[%c0_11, %c0_12], %15 {strides = array<i32>} : memref<8x128xf32, #tpu.memory_space<vmem>>, vector<8x128xf32>,
    } else {
    }
    %c0 = arith.constant 0 : index
    %c0_1 = arith.constant 0 : index
    %3 = vector.load %arg1[%c0, %c0_1] : memref<8x128xf32, #tpu.memory_space<vmem>>, vector<8x128xf32>
    %c0_2 = arith.constant 0 : index
    %c0_3 = arith.constant 0 : index
    %4 = vector.load %arg2[%c0_2, %c0_3] : memref<8x128xf32, #tpu.memory_space<vmem>>, vector<8x128xf32>
    %5 = arith.subf %3, %4 : vector<8x128xf32>
    %6 = arith.mulf %5, %5 : vector<8x128xf32>
    %c0_4 = arith.constant 0 : index
    %c0_5 = arith.constant 0 : index
    %7 = vector.load %arg4[%c0_4, %c0_5] : memref<8x128xf32, #tpu.memory_space<vmem>>, vector<8x128xf32>
    %8 = vector.shape_cast %6 : vector<8x128xf32> to vector<1x8x128xf32>
    %cst = arith.constant dense<0.000000e+00> : vector<8x128xf32>
    %9 = vector.multi_reduction <add>, %8, %cst [0] : vector<1x8x128xf32> to vector<8x128xf32>
    %10 = arith.addf %7, %9 : vector<8x128xf32>
    %c0_6 = arith.constant 0 : index
    %c0_7 = arith.constant 0 : index
    %11 = vector.load %arg4[%c0_6, %c0_7] : memref<8x128xf32, #tpu.memory_space<vmem>>, vector<8x128xf32>
    tpu.vector_store %arg4[%c0_6, %c0_7], %10 {strides = array<i32>} : memref<8x128xf32, #tpu.memory_space<vmem>>, vector<8x128xf32>,
    %c0_i32_8 = arith.constant 0 : i32
    %12 = arith.cmpi eq, %arg0, %c0_i32_8 : i32
    %13 = arith.extui %12 : i1 to i32
    %c0_i32_9 = arith.constant 0 : i32
    %14 = arith.cmpi ne, %13, %c0_i32_9 : i32
    scf.if %14 {
      %c0_10 = arith.constant 0 : index
      %c0_11 = arith.constant 0 : index
      %15 = vector.load %arg4[%c0_10, %c0_11] : memref<8x128xf32, #tpu.memory_space<vmem>>, vector<8x128xf32>
      %16 = vector.shape_cast %15 : vector<8x128xf32> to vector<1x8x128xf32>
      %cst_12 = arith.constant dense<0.000000e+00> : vector<1xf32>
      %17 = vector.multi_reduction <add>, %16, %cst_12 [1, 2] : vector<1x8x128xf32> to vector<1xf32>
      %18 = vector.shape_cast %17 : vector<1xf32> to vector<1x1x1xf32>
      %19 = vector.extract %18[0, 0, 0] : f32 from vector<1x1x1xf32>
      %cst_13 = arith.constant 4.000000e+01 : f32
      %20 = arith.divf %19, %cst_13 : f32
      %cst_14 = arith.constant 9.99999997E-7 : f32
      %21 = arith.addf %20, %cst_14 : f32
      %22 = math.sqrt %21 : f32
      %c0_15 = arith.constant 0 : index
      %c0_16 = arith.constant 0 : index
      %23 = memref.load %arg3[%c0_15, %c0_16] : memref<1x1xf32, #tpu.memory_space<smem>>
      memref.store %22, %arg3[%c0_15, %c0_16] : memref<1x1xf32, #tpu.memory_space<smem>>
    } else {
    }
    return
  }
  func.func @transform_0(%arg0: i32) -> (i32, i32) {
    %c0_i32 = arith.constant 0 : i32
    %c0_i32_0 = arith.constant 0 : i32
    return %arg0, %c0_i32 : i32, i32
  }
  func.func @transform_1(%arg0: i32) -> (i32, i32) {
    %c0_i32 = arith.constant 0 : i32
    %c0_i32_0 = arith.constant 0 : i32
    return %arg0, %c0_i32 : i32, i32
  }
  func.func @transform_2(%arg0: i32) -> (i32, i32) {
    %c0_i32 = arith.constant 0 : i32
    %c0_i32_0 = arith.constant 0 : i32
    %c0_i32_1 = arith.constant 0 : i32
    return %c0_i32, %c0_i32_0 : i32, i32
  }
}

</mosaic_0001>

<bundles_post_ra>
// kernel: tpu_custom_call.1
= control target key start
LH: loop header
LB: loop body
LE: loop exit
PB: predicated region body
PF: predicated region fallthrough
CT: control target
= control target key end

     0   :  { %7 = vsyncpa [#allocation4], 0  ;;  %s217_s0 = inlined_call_operand.hbm [shape: f32[8,128], index: 0, kind: input, shape index: {}]   ;;  %s218_s1 = inlined_call_operand.hbm [shape: f32[8,128], index: 1, kind: input, shape index: {}]   ;;  %s219_s2 = inlined_call_operand.hbm [shape: f32[1,1], index: 2, kind: output, shape index: {}]  }
   0x1   :  { %8 = vsyncpa [#allocation7], 0 }
   0x2   :  { %9 = vsyncpa [#allocation5], 0  ;;  %s15_s11 = sshll.u32 %s217_s0, 4  ;;  %s189_s12 = smov [#allocation3]   ;;  %s16_s11 = int_to_ptr.hbm [resolvable:$true] %s15_s11 }
   0x3   :  { %s17_s13 = sshll.u32 %s189_s12, 4  ;;  %s26_s16 = sshll.u32 %s218_s1, 4  ;;  %s18_s13 = int_to_ptr.vmem [resolvable:$true] %s17_s13  ;;  %s27_s16 = int_to_ptr.hbm [resolvable:$true] %s26_s16 }
   0x4   :  { %20 = dma.hbm_to_vmem [thread:$0]  %s16_s11, 128, %s18_s13, [#allocation4]  }
   0x5   :  { %s190_s17 = smov [#allocation6]  }
   0x6   :  { %s28_s18 = sshll.u32 %s190_s17, 4  ;;  %s29_s18 = int_to_ptr.vmem [resolvable:$true] %s28_s18 }
   0x7   :  { %31 = dma.hbm_to_vmem [thread:$0]  %s27_s16, 128, %s29_s18, [#allocation7]  }
   0x8   :  { %183 = dma.done.wait [#allocation4], 128  }
   0x9   :  { %184 = vsyncadd [#allocation4], 4294967168 }
   0xa   :  { %185 = dma.done.wait [#allocation7], 128  }
   0xb   :  { %186 = vsyncadd [#allocation7], 4294967168  ;;  %v45_v0 = vld [vmem:[#allocation3] sm:$0xff]  ;;  %v46_v1 = vld [vmem:[#allocation6] sm:$0xff]  ;;  %v191_v4 = vmov 40.0   ;;  %s97_s23 = sshll.u32 %s219_s2, 4  ;;  %s98_s23 = int_to_ptr.hbm [resolvable:$true] %s97_s23 }
   0xc   :  { %v47_v2 = vsub.f32 %v45_v0, %v46_v1  ;;  %119 = vrcp.f32 %v191_v4  ;;  %s192_s25 = smov [#allocation8]  }
   0xe   :  { %v48_v3 = vmul.f32 %v47_v2, %v47_v2 }
  0x10   :  { %57 = vadd.xlane.f32.xlu0 %v48_v3 }
  0x12   :  { %v120_v5 = vpop.eup %119 }
  0x13   :  { %v67_v6 = vmul.f32 40.0, %v120_v5  ;;  %vm71_vm0 = vweird.f32 %v120_v5 }
  0x15   :  { %v68_v7 = vsub.f32 1.0, %v67_v6 }
  0x17   :  { %v69_v11 = vmul.f32 %v120_v5, %v68_v7 }
  0x19   :  { %v70_v14 = vadd.f32 %v120_v5, %v69_v11 }
  0x1b   :  { %v72_v17 = vsel %vm71_vm0, %v120_v5, %v70_v14 }
  0x83   :  { %v58_v8 = vpop.xlane.xlu0 %57 }
  0x84   :  { %v59_v9 = vrot.slane %v58_v8, 4 }
  0x86   :  { %v60_v10 = vadd.f32 %v59_v9, %v58_v8 }
  0x88   :  { %v61_v12 = vrot.slane %v60_v10, 2 }
  0x8a   :  { %v62_v13 = vadd.f32 %v61_v12, %v60_v10 }
  0x8c   :  { %v63_v15 = vrot.slane %v62_v13, 1 }
  0x8e   :  { %v64_v16 = vadd.f32 %v63_v15, %v62_v13 }
  0x90   :  { %109 = vpush %v64_v16 }
  0x91   :  { %111 = vpush %v72_v17 }
  0xc1   :  { %s110_s0 = spop %109 }
  0xc2   :  { %s112_s1 = spop %111 }
  0xc3   :  { %s74_s19 = smul.f32 %s112_s1, %s110_s0 }
  0xc5   :  { %s75_s20 = sadd.f32 1e-06, %s74_s19 }
  0xc7   :  { %v76_v18 = vstv %s75_s20 }
  0xc8   :  { %121 = vrsqrt.f32 %v76_v18  ;;  %vm84_vm1 = vcmp.eq.f32.partialorder %v76_v18, inf  ;;  %v87_v26 = vand.u32 2147483648, %v76_v18  ;;  %vm86_vm2 = vcmp.eq.f32.partialorder %v76_v18, 0.0 }
  0xce   :  { %v122_v19 = vpop.eup %121 }
  0xcf   :  { %v78_v20 = vmul.f32 %v122_v19, %v76_v18 }
  0xd1   :  { %v79_v21 = vmul.f32 %v122_v19, %v78_v20 }
  0xd3   :  { %v80_v22 = vmul.f32 0.5, %v79_v21 }
  0xd5   :  { %v81_v23 = vsub.f32 1.5, %v80_v22 }
  0xd7   :  { %v82_v24 = vmul.f32 %v122_v19, %v81_v23 }
  0xd9   :  { %v83_v25 = vmul.f32 %v82_v24, %v76_v18 }
  0xdb   :  { %v85_v27 = vsel %vm84_vm1, %v76_v18, %v83_v25 }
  0xdc   :  { %v88_v28 = vsel %vm86_vm2, %v87_v26, %v85_v27 }
  0xdd   :  { %113 = vpush %v88_v28 }
 0x10e   :  { %s114_s24 = spop %113 }
 0x10f   :  { %91 = sst [smem:[#allocation8]] %s114_s24 }
 0x110   :  { %100 = dma.smem_to_hbm %s192_s25, 16, %s98_s23, [#allocation5]  }
 0x111   :  { %187 = dma.done.wait [#allocation5], 16  }
 0x112   :  { %188 = vsyncadd [#allocation5], 4294967280 }
 0x113   :  { %105 = sfence }
 0x114   :  { %106 = vsyncpa [#allocation4], 1 }
 0x115   :  { %107 = vsyncpa [#allocation7], 1 }
 0x116   :  { %108 = vsyncpa [#allocation5], 1 }

</bundles_post_ra>
